<compile_context>
chip_gen: v7x
topology: tpu7x:2x2x1
jax: 0.10.0
libtpu: 0.0.40
codegen_flags: <defaults>
</compile_context>

<pallas_src>
import functools
import math

import jax
import jax.numpy as jnp
from jax import lax
from jax.experimental import pallas as pl
from jax.experimental.pallas import tpu as pltpu

_EPS = 1e-5


def _rup(x, m):
    return (x + m - 1) // m * m


def _ew_rows(rf, cap=1024):
    """Largest multiple of 16 <= cap that divides rf (rf is a multiple of 16)."""
    best = 16
    d = 16
    top = min(cap, rf)
    while d <= top:
        if rf % d == 0:
            best = d
        d += 16
    return best


# --------------------------------------------------------------------------- kernels

def _conv_kernel(a_ref, b_ref, bias_ref, scale_ref, shift_ref,
                 o_ref, sum_ref, sq_ref, acc_ref,
                 *, kd, pd, d_true, tm, valid_rows, fuse_affine, fuse_relu):
    """One (2+1)D factorized-conv matmul step.

    a_ref : (1, tm, Kp) bf16 operand tile (im2col tile / D-shifted producer tile)
    b_ref : (kd, Kp, Cop) bf16 weights, full array, VMEM-resident for the whole call
    Optional fused per-K-column BN affine (+ReLU) on the operand read, and a fused
    masked BatchNorm-statistics epilogue (column sum / sum-of-squares).
    pl.program_id is only called here at the top level (not inside pl.when bodies).
    """
    d = pl.program_id(0)
    mi = pl.program_id(1)
    t = pl.program_id(2)
    row0 = mi * tm

    @pl.when(t == 0)
    def _init():
        acc_ref[...] = jnp.zeros_like(acc_ref)

    def _accumulate():
        a = a_ref[0]                                       # (tm, Kp) bf16
        if fuse_affine:
            af = a.astype(jnp.float32) * scale_ref[...] + shift_ref[...]
            if fuse_relu:
                af = jnp.maximum(af, 0.0)
            a = af.astype(jnp.bfloat16)
        w = b_ref[0] if kd == 1 else b_ref[t]              # (Kp, Cop) bf16, resident
        acc_ref[...] += jnp.dot(a, w, preferred_element_type=jnp.float32)

    if kd == 1:
        _accumulate()
    else:
        # temporal tap t reads frame d + t - pd; out-of-range tap == zero padding
        d_in = d + t - pd
        pl.when((d_in >= 0) & (d_in < d_true))(_accumulate)

    @pl.when(t == kd - 1)
    def _finalize():
        y = acc_ref[...] + bias_ref[...]                   # (tm, Cop) f32
        o_ref[...] = y.astype(o_ref.dtype)[None]
        rows = row0 + lax.broadcasted_iota(jnp.int32, (tm, 1), 0)
        ym = jnp.where(rows < valid_rows, y, 0.0)          # mask padded frame rows
        sum_ref[...] = jnp.sum(ym, axis=0)[None, None, None]
        sq_ref[...] = jnp.sum(ym * ym, axis=0)[None, None, None]


def _affine_kernel(x_ref, s_ref, t_ref, o_ref):
    o_ref[...] = (x_ref[...].astype(jnp.float32) * s_ref[...] + t_ref[...]
                  ).astype(o_ref.dtype)


def _residual_kernel(z2_ref, s_ref, t_ref, rbn_ref, o_ref):
    # out = relu( BN2(conv2_out) + relu(BN1(conv1_out)) ); BN2 affine fused here.
    bn2 = z2_ref[...].astype(jnp.float32) * s_ref[...] + t_ref[...]
    res1 = jnp.maximum(rbn_ref[...].astype(jnp.float32), 0.0)
    o_ref[...] = jnp.maximum(bn2 + res1, 0.0).astype(o_ref.dtype)


def _pool_head_kernel(sel_ref, x_ref, w_ref, b_ref, o_ref, acc_ref,
                      *, d_steps, m_steps, tm, valid_rows, inv_count):
    """Fused AdaptiveAvgPool3d(1) + Linear.

    Pooling per sample n is a tiny matmul with a 0/1 selection matrix; padded rows are
    masked before the dot so garbage in padded rows can never reach the pooled sums.
    """
    d = pl.program_id(0)
    mi = pl.program_id(1)
    row0 = mi * tm

    @pl.when((d == 0) & (mi == 0))
    def _init():
        acc_ref[...] = jnp.zeros_like(acc_ref)

    x = x_ref[0].astype(jnp.float32)                       # (tm, Cp)
    rows = row0 + lax.broadcasted_iota(jnp.int32, (tm, 1), 0)
    x = jnp.where(rows < valid_rows, x, 0.0)
    acc_ref[...] += jnp.dot(sel_ref[...], x, preferred_element_type=jnp.float32)

    @pl.when((d == d_steps - 1) & (mi == m_steps - 1))
    def _finalize():
        pooled = acc_ref[...] * inv_count                  # (N, Cp)
        o_ref[...] = (jnp.dot(pooled, w_ref[...], preferred_element_type=jnp.float32)
                      + b_ref[...])


# --------------------------------------------------------------------------- wrappers

@functools.partial(jax.jit, static_argnames=("pd", "valid_rows", "relu"))
def fused_conv(a3, w3, bias, scale=None, shift=None, *, pd, valid_rows, relu=False):
    """One factorized-conv matmul with fused BN-stats epilogue.

    a3   : [D, Rf, Kp] bf16 operand (im2col for the spatial conv, producer activation
           for the temporal conv).  Rows >= valid_rows are padding (may hold garbage
           after affine fusion upstream -- always masked from stats / sliced off later).
    w3   : [kd, K, Cout] f32 weights (kd temporal taps; kd=1 for the spatial conv).
    Returns (out [D, Rf, Cop] bf16, mean [Cout] f32, var [Cout] f32) where mean/var are
    the biased batch statistics of the conv output over valid rows.
    """
    a3 = a3.astype(jnp.bfloat16)
    D, Rf, Kp = a3.shape
    kd, K, Cout = w3.shape
    Cop = _rup(Cout, 128)
    tm = min(512, Rf)
    assert Rf % tm == 0, (Rf, tm)
    rb = Rf // tm

    fuse_affine = scale is not None
    if not fuse_affine:
        scale = jnp.zeros((K,), jnp.float32)
        shift = jnp.zeros((K,), jnp.float32)
    s_p = jnp.pad(scale.astype(jnp.float32), (0, Kp - K)).reshape(1, Kp)
    t_p = jnp.pad(shift.astype(jnp.float32), (0, Kp - K)).reshape(1, Kp)
    w_p = jnp.pad(w3, ((0, 0), (0, Kp - K), (0, Cop - Cout))).astype(jnp.bfloat16)
    b_p = jnp.pad(bias.astype(jnp.float32), (0, Cop - Cout)).reshape(1, Cop)

    if kd == 1:
        a_map = lambda d, mi, t: (d, mi, 0)
    else:
        a_map = lambda d, mi, t: (jnp.clip(d + t - pd, 0, D - 1), mi, 0)

    kernel = functools.partial(
        _conv_kernel, kd=kd, pd=pd, d_true=D, tm=tm, valid_rows=valid_rows,
        fuse_affine=fuse_affine, fuse_relu=relu)

    flops = 2 * D * Rf * Kp * Cop * kd
    bytes_accessed = (2 * D * Rf * Kp * kd + 2 * kd * Kp * Cop
                      + 2 * D * Rf * Cop + 8 * D * rb * Cop)

    out, s, sq = pl.pallas_call(
        kernel,
        out_shape=(jax.ShapeDtypeStruct((D, Rf, Cop), jnp.bfloat16),
                   jax.ShapeDtypeStruct((D, rb, 1, Cop), jnp.float32),
                   jax.ShapeDtypeStruct((D, rb, 1, Cop), jnp.float32)),
        grid=(D, rb, kd),
        in_specs=[
            pl.BlockSpec((1, tm, Kp), a_map),
            # full weight array, constant index -> DMA'd once, VMEM-resident
            pl.BlockSpec((kd, Kp, Cop), lambda d, mi, t: (0, 0, 0)),
            pl.BlockSpec((1, Cop), lambda d, mi, t: (0, 0)),
            pl.BlockSpec((1, Kp), lambda d, mi, t: (0, 0)),
            pl.BlockSpec((1, Kp), lambda d, mi, t: (0, 0)),
        ],
        out_specs=(
            pl.BlockSpec((1, tm, Cop), lambda d, mi, t: (d, mi, 0)),
            pl.BlockSpec((1, 1, 1, Cop), lambda d, mi, t: (d, mi, 0, 0)),
            pl.BlockSpec((1, 1, 1, Cop), lambda d, mi, t: (d, mi, 0, 0)),
        ),
        scratch_shapes=[pltpu.VMEM((tm, Cop), jnp.float32)],
        compiler_params=pltpu.CompilerParams(
            dimension_semantics=("parallel", "parallel", "arbitrary"),
            vmem_limit_bytes=48 * 1024 * 1024),
        cost_estimate=pl.CostEstimate(flops=flops, transcendentals=0,
                                      bytes_accessed=bytes_accessed),
    )(a3, w_p, b_p, s_p, t_p)

    count = D * valid_rows
    mean = jnp.sum(s, axis=(0, 1, 2))[:Cout] / count
    # NOTE: E[x^2]-mean^2 in f32 (clamped); a shifted/Welford reduction would be safer
    # for very large counts but is adequate here.
    var = jnp.maximum(jnp.sum(sq, axis=(0, 1, 2))[:Cout] / count - mean * mean, 0.0)
    return out, mean, var


@jax.jit
def bn_affine(x3, scale, shift):
    """Per-channel y = x*scale + shift (pre-ReLU BN output). x3: [D, Rf, Cp] bf16."""
    D, Rf, Cp = x3.shape
    C = scale.shape[0]
    tr = _ew_rows(Rf)
    R = D * Rf
    s_p = jnp.pad(scale.astype(jnp.float32), (0, Cp - C)).reshape(1, Cp)
    t_p = jnp.pad(shift.astype(jnp.float32), (0, Cp - C)).reshape(1, Cp)
    out = pl.pallas_call(
        _affine_kernel,
        out_shape=jax.ShapeDtypeStruct((R, Cp), jnp.bfloat16),
        grid=(R // tr,),
        in_specs=[pl.BlockSpec((tr, Cp), lambda i: (i, 0)),
                  pl.BlockSpec((1, Cp), lambda i: (0, 0)),
                  pl.BlockSpec((1, Cp), lambda i: (0, 0))],
        out_specs=pl.BlockSpec((tr, Cp), lambda i: (i, 0)),
        compiler_params=pltpu.CompilerParams(dimension_semantics=("parallel",)),
    )(x3.reshape(R, Cp), s_p, t_p)
    return out.reshape(D, Rf, Cp)


@jax.jit
def residual_merge(z2, scale2, shift2, res_bn):
    """out = relu((z2*scale2 + shift2) + relu(res_bn)); all [D, Rf, Cp]."""
    D, Rf, Cp = z2.shape
    C = scale2.shape[0]
    tr = _ew_rows(Rf)
    R = D * Rf
    s_p = jnp.pad(scale2.astype(jnp.float32), (0, Cp - C)).reshape(1, Cp)
    t_p = jnp.pad(shift2.astype(jnp.float32), (0, Cp - C)).reshape(1, Cp)
    out = pl.pallas_call(
        _residual_kernel,
        out_shape=jax.ShapeDtypeStruct((R, Cp), jnp.bfloat16),
        grid=(R // tr,),
        in_specs=[pl.BlockSpec((tr, Cp), lambda i: (i, 0)),
                  pl.BlockSpec((1, Cp), lambda i: (0, 0)),
                  pl.BlockSpec((1, Cp), lambda i: (0, 0)),
                  pl.BlockSpec((tr, Cp), lambda i: (i, 0))],
        out_specs=pl.BlockSpec((tr, Cp), lambda i: (i, 0)),
        compiler_params=pltpu.CompilerParams(dimension_semantics=("parallel",)),
    )(z2.reshape(R, Cp), s_p, t_p, res_bn.reshape(R, Cp))
    return out.reshape(D, Rf, Cp)


@functools.partial(jax.jit, static_argnames=("n", "m_true"))
def pool_head(act, w, b, *, n, m_true):
    """Fused AdaptiveAvgPool3d(1) + Linear head.  act: [D, Rf, Cp] bf16 -> [n, F] f32."""
    D, Rf, Cp = act.shape
    tm = min(512, Rf)
    rb = Rf // tm
    K, F = w.shape
    Fp = _rup(F, 128)
    w_p = jnp.pad(w.astype(jnp.float32), ((0, Cp - K), (0, Fp - F)))
    b_p = jnp.pad(b.astype(jnp.float32), (0, Fp - F)).reshape(1, Fp)
    r = jnp.arange(Rf)[None, :]
    nid = jnp.arange(n)[:, None]
    sel = ((r >= nid * m_true) & (r < (nid + 1) * m_true)).astype(jnp.float32)
    kernel = functools.partial(_pool_head_kernel, d_steps=D, m_steps=rb, tm=tm,
                               valid_rows=n * m_true,
                               inv_count=1.0 / float(D * m_true))
    out = pl.pallas_call(
        kernel,
        out_shape=jax.ShapeDtypeStruct((n, Fp), jnp.float32),
        grid=(D, rb),
        in_specs=[pl.BlockSpec((n, tm), lambda d, mi: (0, mi)),
                  pl.BlockSpec((1, tm, Cp), lambda d, mi: (d, mi, 0)),
                  pl.BlockSpec((Cp, Fp), lambda d, mi: (0, 0)),
                  pl.BlockSpec((1, Fp), lambda d, mi: (0, 0))],
        out_specs=pl.BlockSpec((n, Fp), lambda d, mi: (0, 0)),
        scratch_shapes=[pltpu.VMEM((n, Cp), jnp.float32)],
        compiler_params=pltpu.CompilerParams(
            dimension_semantics=("arbitrary", "arbitrary")),
    )(sel, act, w_p, b_p)
    return out[:, :F]


# --------------------------------------------------------------------------- glue

def _bn_scale_shift(mean, var, gamma, beta):
    scale = gamma / jnp.sqrt(var + _EPS)
    return scale, beta - mean * scale


def im2col_spatial(x, kh, kw, sh, sw, ph, pw):
    """x: [D, N, H, W, C] -> ([D, N, Ho*Wo, kh*kw*C], Ho, Wo).  bf16 layout glue."""
    D, N, H, W, C = x.shape
    Ho = (H + 2 * ph - kh) // sh + 1
    Wo = (W + 2 * pw - kw) // sw + 1
    xp = jnp.pad(x, ((0, 0), (0, 0), (ph, ph), (pw, pw), (0, 0)))
    cols = []
    for i in range(kh):
        for j in range(kw):
            cols.append(xp[:, :, i:i + sh * Ho:sh, j:j + sw * Wo:sw, :])
    col = jnp.concatenate(cols, axis=-1)
    return col.reshape(D, N, Ho * Wo, kh * kw * C), Ho, Wo


def block_forward(x5, p, *, stride, padding):
    """`block`: spatialConv -> BatchNorm3d -> ReLU -> temporalConv.

    x5: [D, N, H, W, Cin] bf16 (true, unpadded).  BN stats come from the spatial
    matmul's epilogue; BN affine + ReLU are fused into the temporal conv's operand
    read; the temporal conv reads the spatial output directly (no im2col), walking
    its kd taps via the innermost grid axis.
    Returns (z [D, Rf, Cop] bf16, z_mean, z_var, (Ho, Wo))."""
    D, N = x5.shape[0], x5.shape[1]
    _, kh, kw, cin, interim = p["sw"].shape
    kd = p["tw"].shape[0]
    cout = p["tw"].shape[4]
    _, sh, sw_ = stride                 # temporal stride is always 1 in this model
    pd, ph, pw = padding

    col, Ho, Wo = im2col_spatial(x5, kh, kw, sh, sw_, ph, pw)   # [D, N, HoWo, K]
    m_true = Ho * Wo
    K = kh * kw * cin
    valid_rows = N * m_true
    tm = min(512, _rup(valid_rows, 16))
    rf = _rup(valid_rows, tm)
    kp = _rup(K, 128)
    a = col.reshape(D, valid_rows, K)
    a = jnp.pad(a, ((0, 0), (0, rf - valid_rows), (0, kp - K)))

    # spatial conv (+ fused BN-statistics epilogue)
    y, mean, var = fused_conv(a, p["sw"].reshape(1, K, interim), p["sb"],
                              pd=0, valid_rows=valid_rows)

    # block BN + ReLU fused into the temporal conv; D zero-padding via tap skipping
    scale, shift = _bn_scale_shift(mean, var, p["bn_g"], p["bn_b"])
    z, z_mean, z_var = fused_conv(y, p["tw"].reshape(kd, interim, cout), p["tb"],
                                  scale, shift, pd=pd, valid_rows=valid_rows, relu=True)
    return z, z_mean, z_var, (Ho, Wo)


def resblock_forward(act, p, *, n, h, w):
    """`ResidualBlock` — the SAME BatchNorm module (shared gamma/beta, fresh batch
    stats per call) is applied after both convs, and Conv2 consumes the pre-ReLU BN
    output, exactly as in the PyTorch code:
        out = relu(bn(conv2(bn(conv1(x)))) + relu(bn(conv1(x))))."""
    cin = p["conv1"]["sw"].shape[3]
    cout = p["conv1"]["tw"].shape[4]
    D = act.shape[0]

    x = act[:, :n * h * w, :cin].reshape(D, n, h, w, cin)
    z1, m1, v1, _ = block_forward(x, p["conv1"], stride=(1, 1, 1), padding=(1, 1, 1))
    s1, t1 = _bn_scale_shift(m1, v1, p["bn_g"], p["bn_b"])
    res_bn = bn_affine(z1, s1, t1)                         # BN(conv1(x)), pre-ReLU

    x2 = res_bn[:, :n * h * w, :cout].reshape(D, n, h, w, cout)
    z2, m2, v2, _ = block_forward(x2, p["conv2"], stride=(1, 1, 1), padding=(1, 1, 1))
    s2, t2 = _bn_scale_shift(m2, v2, p["bn_g"], p["bn_b"])

    return residual_merge(z2, s2, t2, res_bn)              # relu(bn2(z2) + relu(res_bn))


def forward(x, params):
    """spatioTemporalClassifier.forward. x: [N, 3, D, H, W] (PyTorch NCDHW)."""
    n = x.shape[0]
    xt = jnp.transpose(x, (2, 0, 3, 4, 1)).astype(jnp.bfloat16)   # [D, N, H, W, C]
    act, _, _, (h, w) = block_forward(xt, params["conv1"],
                                      stride=(1, 2, 2), padding=(1, 3, 3))
    for stage in ("conv2", "conv3", "conv4", "conv5"):             # R2plus1D stacks
        for rp in params[stage]:
            act = resblock_forward(act, rp, n=n, h=h, w=w)
    return pool_head(act, params["lin_w"], params["lin_b"], n=n, m_true=h * w)


# --------------------------------------------------------------------------- params

def _winit(key, shape, scale=0.02):
    return scale * jax.random.normal(key, shape, dtype=jnp.float32)


def init_block_params(key, cin, cout, kernel):
    kd, kh, kw = kernel
    interim = int(math.floor(kd * kh * kw * cin * cout /
                             (kh * kw * cin + kd * cout)))
    ks = jax.random.split(key, 4)
    return dict(
        sw=_winit(ks[0], (1, kh, kw, cin, interim)),          # spatialConv weight
        sb=_winit(ks[1], (interim,), 0.01),                    # spatialConv bias
        tw=_winit(ks[2], (kd, 1, 1, interim, cout)),           # temporalConv weight
        tb=_winit(ks[3], (cout,), 0.01),                       # temporalConv bias
        bn_g=jnp.ones((interim,), jnp.float32),                # BatchNorm3d(interim)
        bn_b=jnp.zeros((interim,), jnp.float32),
    )


def init_res_params(key, cin, cout, kernel=3):
    k1, k2 = jax.random.split(key)
    return dict(
        conv1=init_block_params(k1, cin, cout, (kernel,) * 3),
        conv2=init_block_params(k2, cout, cout, (kernel,) * 3),
        bn_g=jnp.ones((cout,), jnp.float32),                   # shared BatchNorm3d(cout)
        bn_b=jnp.zeros((cout,), jnp.float32),
    )


def init_params(key, classes):
    keys = jax.random.split(key, 15)
    params = dict(conv1=init_block_params(keys[0], 3, 64, (3, 5, 5)))
    stages = (("conv2", 64, 64), ("conv3", 64, 128),
              ("conv4", 128, 256), ("conv5", 256, 512))
    ki = 1
    for name, cin, cout in stages:
        blocks = [init_res_params(keys[ki], cin, cout)]        # layer1
        ki += 1
        for _ in range(2):                                     # depth=1 -> depth+1 extra
            blocks.append(init_res_params(keys[ki], cout, cout))
            ki += 1
        params[name] = blocks
    out_features = 1 if classes == 2 else classes
    params["lin_w"] = _winit(keys[13], (512, out_features))    # stored as [in, out]
    params["lin_b"] = _winit(keys[14], (out_features,), 0.01)
    return params


if __name__ == "__main__":
    CLASSES = 10
    key = jax.random.PRNGKey(0)
    pkey, xkey = jax.random.split(key)
    params = init_params(pkey, CLASSES)
    # Small video batch: [N=2, C=3, T=4, H=8, W=8] (NCDHW, like the PyTorch module)
    x = jax.random.normal(xkey, (2, 3, 4, 8, 8), dtype=jnp.float32)
    out = forward(x, params)
    out = jax.block_until_ready(out)
    assert out.shape == (2, CLASSES), out.shape
    print("KERNEL_OK")
</pallas_src>

<mosaic_0001>
module attributes {stable_mosaic.version = 11 : i64} {
  func.func @_conv_kernel(%arg0: i32, %arg1: i32, %arg2: i32, %arg3: memref<1x64x128xbf16, #tpu.memory_space<vmem>>, %arg4: memref<1x128x128xbf16, #tpu.memory_space<vmem>>, %arg5: memref<1x128xf32, #tpu.memory_space<vmem>>, %arg6: memref<1x128xf32, #tpu.memory_space<vmem>>, %arg7: memref<1x128xf32, #tpu.memory_space<vmem>>, %arg8: memref<1x64x128xbf16, #tpu.memory_space<vmem>>, %arg9: memref<1x1x1x128xf32, #tpu.memory_space<vmem>>, %arg10: memref<1x1x1x128xf32, #tpu.memory_space<vmem>>, %arg11: memref<64x128xf32, #tpu.memory_space<vmem>>) attributes {dimension_semantics = [#tpu.dimension_semantics<parallel>, #tpu.dimension_semantics<parallel>, #tpu.dimension_semantics<arbitrary>], iteration_bounds = array<i64: 4, 1, 1>, scalar_prefetch = 0 : i64, scratch_operands = 1 : i64, tpu.core_type = #tpu.core_type<tc>, window_params = [{transform_indices = @transform_0, window_bounds = array<i64: 1, 64, 128>}, {pipeline_mode = #tpu.pipeline_mode<synchronous>, transform_indices = @transform_1, window_bounds = array<i64: 1, 128, 128>}, {pipeline_mode = #tpu.pipeline_mode<synchronous>, transform_indices = @transform_2, window_bounds = array<i64: 1, 128>}, {pipeline_mode = #tpu.pipeline_mode<synchronous>, transform_indices = @transform_3, window_bounds = array<i64: 1, 128>}, {pipeline_mode = #tpu.pipeline_mode<synchronous>, transform_indices = @transform_4, window_bounds = array<i64: 1, 128>}, {transform_indices = @transform_5, window_bounds = array<i64: 1, 64, 128>}, {transform_indices = @transform_6, window_bounds = array<i64: 1, 1, 1, 128>}, {transform_indices = @transform_7, window_bounds = array<i64: 1, 1, 1, 128>}]} {
    %c64_i32 = arith.constant 64 : i32
    %0 = arith.muli %arg1, %c64_i32 : i32
    %c0_i32 = arith.constant 0 : i32
    %1 = arith.cmpi eq, %arg2, %c0_i32 : i32
    %2 = arith.extui %1 : i1 to i32
    %c0_i32_0 = arith.constant 0 : i32
    %3 = arith.cmpi ne, %2, %c0_i32_0 : i32
    scf.if %3 {
      %cst_12 = arith.constant 0.000000e+00 : f32
      %15 = vector.broadcast %cst_12 : f32 to vector<64x128xf32>
      %c0_13 = arith.constant 0 : index
      %c0_14 = arith.constant 0 : index
      %16 = vector.load %arg11[%c0_13, %c0_14] : memref<64x128xf32, #tpu.memory_space<vmem>>, vector<64x128xf32>
      tpu.vector_store %arg11[%c0_13, %c0_14], %15 {strides = array<i32>} : memref<64x128xf32, #tpu.memory_space<vmem>>, vector<64x128xf32>,
    } else {
    }
    %c0 = arith.constant 0 : index
    %c0_1 = arith.constant 0 : index
    %c0_2 = arith.constant 0 : index
    %4 = vector.load %arg3[%c0, %c0_1, %c0_2] : memref<1x64x128xbf16, #tpu.memory_space<vmem>>, vector<1x64x128xbf16>
    %5 = vector.shape_cast %4 : vector<1x64x128xbf16> to vector<64x128xbf16>
    %c0_3 = arith.constant 0 : index
    %c0_4 = arith.constant 0 : index
    %c0_5 = arith.constant 0 : index
    %6 = vector.load %arg4[%c0_3, %c0_4, %c0_5] : memref<1x128x128xbf16, #tpu.memory_space<vmem>>, vector<1x128x128xbf16>
    %7 = vector.shape_cast %6 : vector<1x128x128xbf16> to vector<128x128xbf16>
    %c0_6 = arith.constant 0 : index
    %c0_7 = arith.constant 0 : index
    %8 = vector.load %arg11[%c0_6, %c0_7] : memref<64x128xf32, #tpu.memory_space<vmem>>, vector<64x128xf32>
    %cst = arith.constant dense<0.000000e+00> : vector<64x128xf32>
    %9 = tpu.matmul %5, %7, %cst {dimension_numbers = #tpu.dot_dimension_numbers<[1], [0], [0], [1], [0, 0, 1, 1], [], []>} : vector<64x128xbf16>, vector<128x128xbf16>, vector<64x128xf32> -> vector<64x128xf32>
    %10 = arith.addf %8, %9 : vector<64x128xf32>
    %c0_8 = arith.constant 0 : index
    %c0_9 = arith.constant 0 : index
    %11 = vector.load %arg11[%c0_8, %c0_9] : memref<64x128xf32, #tpu.memory_space<vmem>>, vector<64x128xf32>
    tpu.vector_store %arg11[%c0_8, %c0_9], %10 {strides = array<i32>} : memref<64x128xf32, #tpu.memory_space<vmem>>, vector<64x128xf32>,
    %c0_i32_10 = arith.constant 0 : i32
    %12 = arith.cmpi eq, %arg2, %c0_i32_10 : i32
    %13 = arith.extui %12 : i1 to i32
    %c0_i32_11 = arith.constant 0 : i32
    %14 = arith.cmpi ne, %13, %c0_i32_11 : i32
    scf.if %14 {
      %c0_12 = arith.constant 0 : index
      %c0_13 = arith.constant 0 : index
      %15 = vector.load %arg11[%c0_12, %c0_13] : memref<64x128xf32, #tpu.memory_space<vmem>>, vector<64x128xf32>
      %c0_14 = arith.constant 0 : index
      %c0_15 = arith.constant 0 : index
      %16 = vector.load %arg5[%c0_14, %c0_15] : memref<1x128xf32, #tpu.memory_space<vmem>>, vector<1x128xf32>
      %17 = vector.broadcast %16 : vector<1x128xf32> to vector<64x128xf32>
      %18 = arith.addf %15, %17 : vector<64x128xf32>
      %19 = arith.truncf %18 : vector<64x128xf32> to vector<64x128xbf16>
      %20 = vector.shape_cast %19 : vector<64x128xbf16> to vector<1x64x128xbf16>
      %c0_16 = arith.constant 0 : index
      %c0_17 = arith.constant 0 : index
      %c0_18 = arith.constant 0 : index
      %21 = vector.load %arg8[%c0_16, %c0_17, %c0_18] : memref<1x64x128xbf16, #tpu.memory_space<vmem>>, vector<1x64x128xbf16>
      tpu.vector_store %arg8[%c0_16, %c0_17, %c0_18], %20 {strides = array<i32>} : memref<1x64x128xbf16, #tpu.memory_space<vmem>>, vector<1x64x128xbf16>,
      %22 = tpu.iota {dimensions = array<i32: 0>} : vector<64x1xi32>
      %23 = vector.broadcast %0 : i32 to vector<64x1xi32>
      %24 = arith.addi %23, %22 : vector<64x1xi32>
      %c50_i32 = arith.constant 50 : i32
      %25 = vector.broadcast %c50_i32 : i32 to vector<64x1xi32>
      %26 = arith.cmpi slt, %24, %25 : vector<64x1xi32>
      %cst_19 = arith.constant 0.000000e+00 : f32
      %27 = vector.shape_cast %26 : vector<64x1xi1> to vector<64x1xi1>
      %28 = vector.broadcast %27 : vector<64x1xi1> to vector<64x128xi1>
      %29 = vector.broadcast %cst_19 : f32 to vector<64x128xf32>
      %30 = arith.select %28, %18, %29 : vector<64x128xi1>, vector<64x128xf32>
      %cst_20 = arith.constant dense<0.000000e+00> : vector<128xf32>
      %31 = vector.multi_reduction <add>, %30, %cst_20 [0] : vector<64x128xf32> to vector<128xf32>
      %32 = vector.shape_cast %31 : vector<128xf32> to vector<1x1x1x128xf32>
      %c0_21 = arith.constant 0 : index
      %c0_22 = arith.constant 0 : index
      %c0_23 = arith.constant 0 : index
      %c0_24 = arith.constant 0 : index
      %33 = vector.load %arg9[%c0_21, %c0_22, %c0_23, %c0_24] : memref<1x1x1x128xf32, #tpu.memory_space<vmem>>, vector<1x1x1x128xf32>
      tpu.vector_store %arg9[%c0_21, %c0_22, %c0_23, %c0_24], %32 {strides = array<i32>} : memref<1x1x1x128xf32, #tpu.memory_space<vmem>>, vector<1x1x1x128xf32>,
      %34 = arith.mulf %30, %30 : vector<64x128xf32>
      %cst_25 = arith.constant dense<0.000000e+00> : vector<128xf32>
      %35 = vector.multi_reduction <add>, %34, %cst_25 [0] : vector<64x128xf32> to vector<128xf32>
      %36 = vector.shape_cast %35 : vector<128xf32> to vector<1x1x1x128xf32>
      %c0_26 = arith.constant 0 : index
      %c0_27 = arith.constant 0 : index
      %c0_28 = arith.constant 0 : index
      %c0_29 = arith.constant 0 : index
      %37 = vector.load %arg10[%c0_26, %c0_27, %c0_28, %c0_29] : memref<1x1x1x128xf32, #tpu.memory_space<vmem>>, vector<1x1x1x128xf32>
      tpu.vector_store %arg10[%c0_26, %c0_27, %c0_28, %c0_29], %36 {strides = array<i32>} : memref<1x1x1x128xf32, #tpu.memory_space<vmem>>, vector<1x1x1x128xf32>,
    } else {
    }
    return
  }
  func.func @transform_0(%arg0: i32, %arg1: i32, %arg2: i32) -> (i32, i32, i32) {
    %c0_i32 = arith.constant 0 : i32
    %c0_i32_0 = arith.constant 0 : i32
    return %arg0, %arg1, %c0_i32 : i32, i32, i32
  }
  func.func @transform_1(%arg0: i32, %arg1: i32, %arg2: i32) -> (i32, i32, i32) {
    %c0_i32 = arith.constant 0 : i32
    %c0_i32_0 = arith.constant 0 : i32
    %c0_i32_1 = arith.constant 0 : i32
    %c0_i32_2 = arith.constant 0 : i32
    return %c0_i32, %c0_i32_0, %c0_i32_1 : i32, i32, i32
  }
  func.func @transform_2(%arg0: i32, %arg1: i32, %arg2: i32) -> (i32, i32) {
    %c0_i32 = arith.constant 0 : i32
    %c0_i32_0 = arith.constant 0 : i32
    %c0_i32_1 = arith.constant 0 : i32
    return %c0_i32, %c0_i32_0 : i32, i32
  }
  func.func @transform_3(%arg0: i32, %arg1: i32, %arg2: i32) -> (i32, i32) {
    %c0_i32 = arith.constant 0 : i32
    %c0_i32_0 = arith.constant 0 : i32
    %c0_i32_1 = arith.constant 0 : i32
    return %c0_i32, %c0_i32_0 : i32, i32
  }
  func.func @transform_4(%arg0: i32, %arg1: i32, %arg2: i32) -> (i32, i32) {
    %c0_i32 = arith.constant 0 : i32
    %c0_i32_0 = arith.constant 0 : i32
    %c0_i32_1 = arith.constant 0 : i32
    return %c0_i32, %c0_i32_0 : i32, i32
  }
  func.func @transform_5(%arg0: i32, %arg1: i32, %arg2: i32) -> (i32, i32, i32) {
    %c0_i32 = arith.constant 0 : i32
    %c0_i32_0 = arith.constant 0 : i32
    return %arg0, %arg1, %c0_i32 : i32, i32, i32
  }
  func.func @transform_6(%arg0: i32, %arg1: i32, %arg2: i32) -> (i32, i32, i32, i32) {
    %c0_i32 = arith.constant 0 : i32
    %c0_i32_0 = arith.constant 0 : i32
    %c0_i32_1 = arith.constant 0 : i32
    return %arg0, %arg1, %c0_i32, %c0_i32_0 : i32, i32, i32, i32
  }
  func.func @transform_7(%arg0: i32, %arg1: i32, %arg2: i32) -> (i32, i32, i32, i32) {
    %c0_i32 = arith.constant 0 : i32
    %c0_i32_0 = arith.constant 0 : i32
    %c0_i32_1 = arith.constant 0 : i32
    return %arg0, %arg1, %c0_i32, %c0_i32_0 : i32, i32, i32, i32
  }
}

</mosaic_0001>

<bundles_post_ra>
// kernel: fused_conv.1
= control target key start
LH: loop header
LB: loop body
LE: loop exit
PB: predicated region body
PF: predicated region fallthrough
CT: control target
= control target key end

     0   :  { %13 = vsyncpa [#allocation4], 0  ;;  %s1346_s0 = inlined_call_operand.vmem [shape: bf16[4,64,128], index: 0, kind: input, shape index: {}]   ;;  %s1347_s1 = inlined_call_operand.vmem [shape: bf16[1,128,128], index: 1, kind: input, shape index: {}]   ;;  %s1348_s2 = inlined_call_operand.vmem [shape: f32[1,128], index: 2, kind: input, shape index: {}]   ;;  %s1349_s3 = inlined_call_operand.vmem [shape: f32[1,128], index: 3, kind: input, shape index: {}, may-alias: {3,4}]   ;;  %s1350_s4 = inlined_call_operand.vmem [shape: f32[1,128], index: 4, kind: input, shape index: {}, may-alias: {3,4}]   ;;  %s1351_s5 = inlined_call_operand.hbm [shape: bf16[4,64,128], index: 5, kind: output, shape index: {0}]   ;;  %s1352_s6 = inlined_call_operand.vmem [shape: f32[4,1,1,128], index: 6, kind: output, shape index: {1}]   ;;  %s1353_s7 = inlined_call_operand.vmem [shape: f32[4,1,1,128], index: 7, kind: output, shape index: {2}]  }
   0x1   :  { %15 = vsyncpa [#allocation4 + $0x1], 0  ;;  %s1178_s24 = smov 0   ;;  %s1180_s25 = smov 0  }
   0x2   :  { %s1182_s26 = smov 0   ;;  %s1184_s3 = smov 0  }
   0x3   :  { %s1186_s4 = smov 0   ;;  %s1188_s27 = smov 0  }
   0x4 LB: > { %s867_s28 = sadd.s32 4294967295, %s1133_s27   ;;  %s868_s29 = sadd.s32 4294967294, %s1133_s27   ;;  %s1133_s27 = sphi %s1188_s27, %s21_s27   ;;  %s1129_s4 = sphi %s1186_s4, %s1360_s4   ;;  %s1125_s3 = sphi %s1184_s3, %s1359_s3   ;;  %s1121_s26 = sphi %s1182_s26, %s1358_s26   ;;  %s1117_s25 = sphi %s1180_s25, %s1357_s25   ;;  %s1113_s24 = sphi %s1178_s24, %s1356_s24  }
   0x5   : > { %s40_s30 = sadd.s32 1, %s1129_s4  ;;  %s161_s8 = sadd.s32 1, %s1121_s26 }
   0x6   : > { %p42_p0 = scmp.ge.s32.totalorder %s40_s30, 4  ;;  %p171_p1 = scmp.ne.s32.totalorder %s1121_s26, %s1117_s25 }
   0x7   : > { %p172_p2 = scmp.eq.s32.totalorder %s867_s28, 3  ;;  %p177_p3 = scmp.ne.s32.totalorder %s1117_s25, %s1113_s24 }
   0x8   : > { %s1362_s30 = smov (%p42_p0, %s40_s30), 0  ;;  %p178_p5 = scmp.eq.s32.totalorder %s868_s29, 3 }
   0x9   : > { %p1218_p4 = por %p172_p2, %p171_p1  ;;  %s156_s10 = ssub.s32 %s1129_s4, %s1362_s30 }
   0xa   : > { %p871_p6 = scmp.ge.s32.totalorder %s1133_s27, 1  ;;  %p159_p7 = scmp.eq.s32.totalorder %s156_s10, 0 }
   0xb   : > { %p1225_p8 = por %p178_p5, %p177_p3  ;;  %p277_p9 = scmp.lt.s32.totalorder %s1133_s27, 5 }
   0xc   : > { %s1231_s12 = scalar_select %p159_p7, %s1121_s26, %s161_s8  }
   0xd   : > { %p278_p10 = pnand %p871_p6, %p277_p9 }
   0xe   : > { %v1043_v0 = vld [vmem:[%s1347_s1] sm:$0xff] (!%p278_p10)   ;;  %p326_p11 = scmp.lt.s32.totalorder (!%p278_p10), %s1125_s3, 3  ;;  %v1044_v1 = vld [vmem:[%s1347_s1 + $0x8] sm:$0xff] (!%p278_p10)   ;;  %v1045_v2 = vld [vmem:[%s1347_s1 + $0x10] sm:$0xff] (!%p278_p10)   ;;  %v613_v12 = vlaneseq (!%p278_p10)  ;;  %s910_s8 = sshll.u32 (!%p278_p10), %s1125_s3, 9 }
   0xf   : > { %281 = sbr.rel (%p278_p10) target bundleno = 302 (0x12e), region = 40  ;;  %946 = vmatprep.subr.bf16.mxu0 (!%p278_p10), %v1043_v0  ;;  %970 = vmatprep.subr.bf16.mxu1 (!%p278_p10), %v1043_v0  ;;  %v1046_v3 = vld [vmem:[%s1347_s1 + $0x18] sm:$0xff] (!%p278_p10)   ;;  %v1047_v6 = vld [vmem:[%s1347_s1 + $0x20] sm:$0xff] (!%p278_p10)   ;;  %v1048_v7 = vld [vmem:[%s1347_s1 + $0x28] sm:$0xff] (!%p278_p10)   ;;  %s1284_s14 = scalar_lea.hbm (!%p278_p10), %s1351_s5, %s910_s8 }
  0x10   : > { %947 = vmatpush3.bf16.msra.mxu0 (!%p278_p10), %v1043_v0  ;;  %978 = vmatpush3.bf16.msra.mxu1 (!%p278_p10), %v1043_v0  ;;  %v1049_v8 = vld [vmem:[%s1347_s1 + $0x30] sm:$0xff] (!%p278_p10)   ;;  %v1050_v9 = vld [vmem:[%s1347_s1 + $0x38] sm:$0xff] (!%p278_p10)   ;;  %v887_v13 = vld [vmem:[%s1348_s2] ss:$0 sm:$0xff] (!%p278_p10)  ;;  %v614_v18 = vshrl.u32 (!%p278_p10), %v613_v12, 7  ;;  %s1135_s16 = smov (!%p278_p10), [#allocation3]  }
  0x11   : > { %948 = vmatprep.subr.bf16.mxu0 (!%p278_p10), %v1044_v1  ;;  %971 = vmatprep.subr.bf16.mxu1 (!%p278_p10), %v1044_v1  ;;  %s1059_s18 = sshll.u32 (!%p278_p10), %s1135_s16, 4  ;;  %s1060_s18 = int_to_ptr.vmem [resolvable:$false] %s1059_s18 }
  0x12   : > { %v620_v31 = vadd.s32 (!%p278_p10), 48, %v614_v18  ;;  %s1061_s19 = scalar_lea.vmem (!%p278_p10), %s1060_s18, 1024 }
  0x14   : > { %949 = vmatpush3.bf16.msra.mxu0 (!%p278_p10), %v1044_v1  ;;  %979 = vmatpush3.bf16.msra.mxu1 (!%p278_p10), %v1044_v1  ;;  %vm637_vm0 = vcmp.lt.s32.totalorder (!%p278_p10), %v620_v31, 50 }
  0x15   : > { %950 = vmatprep.subr.bf16.mxu0 (!%p278_p10), %v1045_v2  ;;  %972 = vmatprep.subr.bf16.mxu1 (!%p278_p10), %v1045_v2 }
  0x16   : > { %s1241_s17 = scalar_select %p326_p11, %s1125_s3, 3 }
  0x18   : > { %s901_s20 = sshll.u32 %s1241_s17, 5  ;;  %951 = vmatpush3.bf16.msra.mxu0 %v1045_v2  ;;  %980 = vmatpush3.bf16.msra.mxu1 %v1045_v2 }
  0x19   : > { %s1250_s23 = scalar_lea.vmem %s1346_s0, %s901_s20  ;;  %952 = vmatprep.subr.bf16.mxu0 %v1046_v3  ;;  %973 = vmatprep.subr.bf16.mxu1 %v1046_v3  ;;  %s306_s20 = sand.u32 1, %s1117_s25  }
  0x1a   : > { %v1051_v4 = vld [vmem:[%s1250_s23] sm:$0xff]   ;;  %v1053_v5 = vld [vmem:[%s1250_s23 + $0x10] sm:$0xff]   ;;  %v1052_v10 = vld [vmem:[%s1250_s23 + $0x8] sm:$0xff]   ;;  %s872_s28 = sshll.u32 %s306_s20, 5  ;;  %s1290_s3 = scalar_lea.sflag [#allocation4], %s306_s20 }
  0x1b   : > { %962 = vmatprep.mubr.bf16.mxu0 %v1051_v4  ;;  %966 = vmatprep.mubr.bf16.mxu1 %v1053_v5  ;;  %v1054_v11 = vld [vmem:[%s1250_s23 + $0x18] sm:$0xff]   ;;  %s308_s23 = scalar_lea.vmem [#allocation3], %s872_s28 }
  0x1c   : > { %953 = vmatpush3.bf16.msra.mxu0 %v1046_v3  ;;  %981 = vmatpush3.bf16.msra.mxu1 %v1046_v3  ;;  %s727_s29 = sshll.u32 %s308_s23, 4  ;;  %s1286_s29 = int_to_ptr.vmem [resolvable:$true] %s727_s29 }
  0x1d   : > { %954 = vmatprep.subr.bf16.mxu0 %v1047_v6  ;;  %974 = vmatprep.subr.bf16.mxu1 %v1047_v6  ;;  %s1055_s15 = scalar_lea.vmem %s1286_s29, 512  ;;  %p1062_p1 = scmp.lt.s32.totalorder %s1286_s29, %s1060_s18 }
  0x1e   : > { %p1056_p12 = scmp.ne.s32.totalorder %s1286_s29, %s1055_s15  ;;  %p1063_p2 = scmp.lt.s32.totalorder %s1061_s19, %s1055_s15 }
  0x20   : > { %955 = vmatpush3.bf16.msra.mxu0 %v1047_v6  ;;  %982 = vmatpush3.bf16.msra.mxu1 %v1047_v6  ;;  %p1057_p13 = pnand %p1056_p12, %p1218_p4  ;;  %p1064_p3 = por %p1063_p2, %p1062_p1 }
  0x21   : > { %956 = vmatprep.subr.bf16.mxu0 %v1048_v7  ;;  %975 = vmatprep.subr.bf16.mxu1 %v1048_v7 }
  0x22   : > { %p1058_p0 = pneg %p1057_p13 }
  0x24   : > { %957 = vmatpush3.bf16.msra.mxu0 %v1048_v7  ;;  %983 = vmatpush3.bf16.msra.mxu1 %v1048_v7  ;;  %p1065_p5 = pnand %p1064_p3, %p1058_p0 }
  0x25   : > { %958 = vmatprep.subr.bf16.mxu0 %v1049_v8  ;;  %976 = vmatprep.subr.bf16.mxu1 %v1049_v8 }
  0x28   : > { %959 = vmatpush3.bf16.msra.mxu0 %v1049_v8  ;;  %984 = vmatpush3.bf16.msra.mxu1 %v1049_v8 }
  0x29   : > { %960 = vmatprep.subr.bf16.mxu0 %v1050_v9  ;;  %977 = vmatprep.subr.bf16.mxu1 %v1050_v9 }
  0x2c   : > { %961 = vmatpush3.bf16.msra.mxu0 %v1050_v9  ;;  %985 = vmatpush3.bf16.msra.mxu1 %v1050_v9 }
  0x2f   : > { %963 = vmatmul.mubr.bf16.vlgmr.msra.gmra.mrb[0].mxu0 %v1052_v10  ;;  %967 = vmatmul.mubr.bf16.vlgmr.msra.gmra.mrb[0].mxu1 %v1054_v11 }
 0x102   : > { %v964_v14 = vpop.f32.mrb[0].mxu0  ;;  %v968_v15 = vpop.f32.mrb[0].mxu1 }
 0x103   : > { %v500_v16 = vpop.f32.mrb[1].mxu0  ;;  %v1277_v17 = vadd.f32 %v968_v15, %v887_v13  ;;  %v516_v19 = vpop.f32.mrb[1].mxu1  ;;  %v567_v23 = vadd.f32 %v964_v14, %v887_v13 }
 0x104   : > { %v565_v20 = vadd.f32 %v887_v13, %v500_v16  ;;  %v965_v21 = vpop.f32.mrb[2].mxu0  ;;  %v969_v22 = vpop.f32.mrb[2].mxu1  ;;  %v569_v26 = vadd.f32 %v887_v13, %v516_v19 }
 0x105   : > { %v568_v24 = vadd.f32 %v965_v21, %v887_v13  ;;  %v503_v25 = vpop.f32.mrb[3].mxu0  ;;  %v572_v27 = vadd.f32 %v969_v22, %v887_v13  ;;  %v519_v28 = vpop.f32.mrb[3].mxu1  ;;  %v679_v39 = vmul.f32 %v567_v23, %v567_v23 }
 0x106   : > { %v566_v29 = vadd.f32 %v887_v13, %v503_v25  ;;  %v570_v33 = vadd.f32 %v887_v13, %v519_v28  ;;  %v677_v34 = vmul.f32 %v565_v20, %v565_v20  ;;  %v681_v45 = vmul.f32 %v569_v26, %v569_v26 }
 0x107   : > { %v919_v30 = vpack.c.bf16 %v568_v24, %v567_v23  ;;  %v929_v32 = vpack.c.bf16 %v572_v27, %v1277_v17  ;;  %v680_v42 = vmul.f32 %v568_v24, %v568_v24 }
 0x108   : > { %v914_v35 = vpack.c.bf16 %v566_v29, %v565_v20  ;;  %v663_v36 = vadd.f32 %v566_v29, %v565_v20  ;;  %v678_v37 = vmul.f32 %v566_v29, %v566_v29  ;;  %v924_v38 = vpack.c.bf16 %v570_v33, %v569_v26 }
 0x109   : > { %931 = vst [vmem:[%s308_s23 + $0x8] sm:$0xff] %v919_v30   ;;  %933 = vst [vmem:[%s308_s23 + $0x18] sm:$0xff] %v929_v32  }
 0x10a   : > { %915 = vst [vmem:[%s308_s23] sm:$0xff] %v914_v35   ;;  %v664_v40 = vadd.f32 %v663_v36, %v567_v23  ;;  %v685_v41 = vadd.f32 %v678_v37, %v677_v34  ;;  %932 = vst [vmem:[%s308_s23 + $0x10] sm:$0xff] %v924_v38  }
 0x10c   : > { %v686_v43 = vadd.f32 %v685_v41, %v679_v39  ;;  %v665_v44 = vadd.f32 %v664_v40, %v568_v24 }
 0x10d   : > { %1068 = shalt.err (!%p1065_p5)
}
 0x10e   : > { %s1069_s20 = scalar_lea.hbm %s1284_s14, 512  ;;  %s1073_s28 = scalar_lea.hbm %s1351_s5, 2048 }
 0x10f   : > { %p1070_p6 = scmp.ne.s32.totalorder %s1284_s14, %s1069_s20  ;;  %p1074_p10 = scmp.lt.u32.totalorder %s1284_s14, %s1351_s5 }
 0x110   : > { %p1075_p11 = scmp.lt.u32.totalorder %s1073_s28, %s1069_s20  ;;  %p1077_p13 = scmp.lt.u32.totalorder %s1069_s20, %s1284_s14 }
 0x111   : > { %p1071_p7 = pnand %p1070_p6, %p1218_p4 }
 0x112   : > { %p1076_p12 = por %p1075_p11, %p1074_p10 }
 0x113   : > { %p1072_p9 = pneg %p1071_p7 }
 0x114   : > { %p1078_p0 = por %p1077_p13, %p1076_p12 }
 0x116   : > { %p1079_p1 = pnand %p1078_p0, %p1072_p9 }
 0x118   : > { %1082 = shalt.err (!%p1079_p1)
}
 0x119   : > { %s1136_s10 = smov 64   ;;  %s1137_s13 = smov 4   ;;  %v666_v46 = vadd.f32 %v665_v44, %v569_v26  ;;  %v687_v47 = vadd.f32 %v686_v43, %v680_v42  ;;  %v661_v48 = vsel %vm637_vm0, %v1277_v17, 0.0  ;;  %v682_v51 = vmul.f32 %v570_v33, %v570_v33 }
 0x11a   : > { %986 = dma.vmem_to_hbm [thread:$0]  (%p1218_p4), %s1286_s29, 512, %s1284_s14, %s1290_s3, %s1136_s10, %s1136_s10, %s1137_s13   ;;  %v683_v52 = vmul.f32 %v661_v48, %v661_v48 }
 0x11b   : > { %v688_v49 = vadd.f32 %v687_v47, %v681_v45  ;;  %v667_v50 = vadd.f32 %v666_v46, %v570_v33  ;;  %s341_s14 = scalar_lea.vmem %s1352_s6, %s1241_s17  ;;  %s347_s16 = scalar_lea.vmem %s1353_s7, %s1241_s17 }
 0x11d   : > { %v668_v53 = vadd.f32 %v667_v50, %v661_v48  ;;  %v689_v54 = vadd.f32 %v688_v49, %v682_v51 }
 0x11f   : > { %v670_v55 = vrot.slane %v668_v53, 4  ;;  %v690_v56 = vadd.f32 %v689_v54, %v683_v52 }
 0x121   : > { %v671_v57 = vadd.f32 %v670_v55, %v668_v53  ;;  %v692_v58 = vrot.slane %v690_v56, 4 }
 0x123   : > { %v672_v59 = vrot.slane %v671_v57, 2  ;;  %v693_v60 = vadd.f32 %v692_v58, %v690_v56 }
 0x125   : > { %v673_v61 = vadd.f32 %v672_v59, %v671_v57  ;;  %v694_v62 = vrot.slane %v693_v60, 2 }
 0x127   : > { %v674_v63 = vrot.slane %v673_v61, 1  ;;  %v695_v0 = vadd.f32 %v694_v62, %v693_v60 }
 0x129   : > { %v675_v1 = vadd.f32 %v674_v63, %v673_v61  ;;  %v696_v2 = vrot.slane %v695_v0, 1 }
 0x12b   : > { %676 = vst [vmem:[%s341_s14] sm:$0x1] %v675_v1  ;;  %v697_v3 = vadd.f32 %v696_v2, %v695_v0 }
 0x12d   : > { %698 = vst [vmem:[%s347_s16] sm:$0x1] %v697_v3 }
 0x12e PF: > { %p992_p4 = scmp.ge.s32.totalorder %s1133_s27, 2  ;;  %s748_s18 = sand.u32 1, %s1113_s24  }
 0x12f   : > { %s749_s19 = scalar_lea.sflag [#allocation4], %s748_s18 }
 0x130   : > { %p989_p2 = pnand %p992_p4, %p1225_p8 }
 0x132   : > { %1108 = dma.done.wait (!%p989_p2), %s749_s19, 512  }
 0x133   : > { %1110 = vsyncadd (!%p989_p2), %s749_s19, 4294966784  ;;  %s21_s27 = sadd.s32 1, %s1133_s27   ;;  %s1356_s24 = smov %s1117_s25 }
 0x134   : > { %p18_p3 = scmp.ge.s32.totalorder %s21_s27, 6   ;;  %s1357_s25 = smov %s1121_s26 }
 0x135   : > { %s1358_s26 = smov %s1231_s12  ;;  %s1359_s3 = smov %s1129_s4 }
 0x136   : > { %s1360_s4 = smov %s1362_s30  ;;  %20 = sbr.rel (!%p18_p3) target bundleno = 4 (0x4), region = 107 }
 0x13d   :  { %772 = vsyncpa [#allocation4], 1 }
 0x13e   :  { %774 = vsyncpa [#allocation4 + $0x1], 1 }

</bundles_post_ra>
